<compile_context>
chip_gen: v5e
topology: v5e:2x2
jax: 0.10.0
libtpu: 0.0.40
codegen_flags: <defaults>
</compile_context>

<pallas_src>
import functools

import jax
import jax.numpy as jnp
from jax.experimental import pallas as pl
from jax.experimental.pallas import tpu as pltpu

KSIZE = 3                      # temporal kernel size (nn.Conv2d(..., (1, 3)))
_MAX_UNROLLED_STORES = 16      # per-node store loop is unrolled up to this many nodes


# --------------------------------------------------------------------------- kernel
def _timeblock_kernel(x_ref, w_ref, b_ref, o_ref):
    """relu(y1 + sigmoid(y2) + y3), p time steps packed per row (lane-dense output).

    x_ref : (tr*Tp, p*Cin)         f32  -- tr whole (batch,node) series; row R of a node
                                           holds input times R*p .. R*p+p-1
    w_ref : (ns*p*Cin, 3*p*Cout)   f32  -- [conv1 | conv2 | conv3], each block p*Cout wide
                                           in packed lane order (q*Cout + o), structured 0s
    b_ref : (1, 3*p*Cout)          f32
    o_ref : (tr, To_p, p*Cout)     f32  -- To_p = (T-K+1)/p valid packed rows per node
    """
    tr, t_out_p, pc = o_ref.shape
    rows, pcin = x_ref.shape
    t_pack = rows // tr
    n_shift = w_ref.shape[0] // pcin

    x = x_ref[...]  # (rows, p*Cin) f32

    # In-VMEM im2col: lane-concat of sublane-rolled copies (XLU slot, essentially free).
    # pieces[s][R] = x[(R+s) mod rows]; the roll wrap-around only pollutes the trailing
    # (t_pack - t_out_p) packed rows of each node, and those are never stored below.
    pieces = [x] + [pltpu.roll(x, shift=rows - s, axis=0) for s in range(1, n_shift)]
    xw = jnp.concatenate(pieces, axis=-1) if n_shift > 1 else x   # (rows, ns*p*Cin)

    # Single MXU pass for all three convolutions x p time offsets.  f32 operands: the
    # contraction depth (ns*p*Cin) is tiny, so the MXU is massively underutilized by
    # design and bf16 operands would trade precision for no wall-time gain.
    y = jnp.dot(xw, w_ref[...], preferred_element_type=jnp.float32) + b_ref[...]

    # Columns are [conv1 | conv2 | conv3], each p*Cout wide and already in the packed
    # output lane order, so the slices are 128-lane aligned (when p*Cout == 128) and the
    # epilogue result IS the lane-dense output slab -- no reshape, no per-q loop.
    y1 = y[:, :pc]
    y2 = y[:, pc:2 * pc]
    y3 = y[:, 2 * pc:3 * pc]
    act = jnp.maximum(y1 + jax.nn.sigmoid(y2) + y3, 0.0)          # (rows, p*Cout) f32

    # Drop the invalid trailing packed rows of every node inside the kernel.
    # The planner keeps tr small, so this is a short unrolled loop of full-width stores.
    if tr <= _MAX_UNROLLED_STORES:
        for n in range(tr):
            o_ref[n] = act[n * t_pack:n * t_pack + t_out_p, :]
    else:
        def _store(n, carry):
            o_ref[n] = jax.lax.dynamic_slice_in_dim(act, n * t_pack, t_out_p, axis=0)
            return carry
        jax.lax.fori_loop(0, tr, _store, 0)


# ----------------------------------------------------------------- parameter packing
def _choose_pack(t_in, t_out, cout, max_p=8):
    """Time steps packed per output row so the store lane width is a multiple of 128."""
    if cout % 128 == 0:
        return 1
    for p in range(2, max_p + 1):
        if t_in % p == 0 and t_out % p == 0 and (p * cout) % 128 == 0:
            return p
    return 1   # fall back to narrower (masked) stores; still correct
    # TODO(synk): odd T with Cout<128 falls back to masked stores (no clean packing).


def prepare_timeblock_params(w1, b1, w2, b2, w3, b3, t_in):
    """One-time weight/bias packing (hoisted out of the per-call jit).

    Weight layout w*[k, c, o]  (PyTorch: conv.weight[o, c, 0, k]); bias b*: (1, Cout).
    Returns (w_big, b_big, p) with
      w_big[(q+k)*Cin + c, j*p*Cout + q*Cout + o] = w_{j}[k, c, o]   (zeros elsewhere)
      b_big[0,            j*p*Cout + q*Cout + o] = b_{j}[0, o]
    so one matmul against the packed im2col yields, per row, the three conv outputs for
    p consecutive time steps, already in lane-dense packed order.
    """
    ksize, cin, cout = w1.shape
    t_out = t_in - ksize + 1
    p = _choose_pack(t_in, t_out, cout)
    assert p == 1 or (ksize - 1) % p == 0          # guaranteed by _choose_pack
    n_shift = -(-(p + ksize - 1) // p)             # packed x-rows touched per output row

    ws = (w1, w2, w3)
    w_big = jnp.zeros((n_shift * p * cin, 3 * p * cout), jnp.float32)
    for j in range(3):
        for q in range(p):
            col = j * p * cout + q * cout
            for k in range(ksize):
                m = q + k
                w_big = w_big.at[m * cin:(m + 1) * cin, col:col + cout].set(
                    ws[j][k].astype(jnp.float32))
    b_big = jnp.concatenate(
        [jnp.tile(b.astype(jnp.float32), (1, p)) for b in (b1, b2, b3)], axis=-1)
    return w_big, b_big, p


# ------------------------------------------------------------------------ grid planning
def _pad128(n):
    return -(-n // 128) * 128


def _round8(n):
    return -(-n // 8) * 8


def _divisors(n):
    out, d = [], 1
    while d * d <= n:
        if n % d == 0:
            out.append(d)
            if d != n // d:
                out.append(n // d)
        d += 1
    return sorted(out)


def _plan_grid(bn, t_pack, per_row_bytes, fixed_bytes,
               budget_bytes=12 << 20, min_steps=8,
               max_unroll=_MAX_UNROLLED_STORES, max_pad=64):
    """Choose (bn_padded, g, tr): grid=(g,), each block = tr whole (batch,node) series.

    Preference order: per-step VMEM footprint within budget (v7x: 64 MiB physical /
    32 MiB default scoped; also safely under v5e's 16 MiB default) > at least
    `min_steps` grid steps (pipeline overlap, and >=4 per TensorCore on v7x) >
    store loop short enough to unroll > least dummy-node padding > fewest steps.
    """
    best = None
    for pad in range(max_pad + 1):
        bnp = bn + pad
        for g in _divisors(bnp):
            tr = bnp // g
            if g > 1 and (tr * t_pack) % 8 != 0:        # (8,128) BlockSpec constraint
                continue
            foot = fixed_bytes + tr * t_pack * per_row_bytes
            score = (0 if foot <= budget_bytes else 1,
                     0 if g >= min(min_steps, bn) else 1,
                     0 if tr <= max_unroll else 1,
                     pad, g)
            if best is None or score < best[0]:
                best = (score, bnp, g, tr, foot)
        if best is not None and best[0][:4] == (0, 0, 0, 0):
            break
    _, bnp, g, tr, foot = best
    return bnp, g, tr, foot


# --------------------------------------------------------------------------- wrapper
@functools.partial(jax.jit, static_argnames=("p", "kernel_size"))
def time_block(x, w_big, b_big, *, p=1, kernel_size=KSIZE):
    """TimeBlock forward.  x: (B, N, T, Cin) -> (B, N, T-K+1, Cout), float32.

    w_big, b_big, p come from prepare_timeblock_params (call once per model).
    """
    B, N, T, Cin = x.shape
    assert T >= kernel_size, "need T >= kernel_size"
    t_out = T - kernel_size + 1
    assert T % p == 0 and t_out % p == 0, "pack factor must divide T and T_out"

    pc3 = b_big.shape[-1]                 # 3 * p * Cout
    pc = pc3 // 3                         # p * Cout (output lane width)
    cout = pc // p
    assert w_big.shape[0] % (p * Cin) == 0
    n_shift = w_big.shape[0] // (p * Cin)

    bn = B * N
    t_pack = T // p                       # packed rows per node
    t_out_p = t_out // p                  # valid packed rows per node

    # Per-step VMEM footprint (f32, lane-padded to 128; the skinny (rows, p*Cin) input
    # block inflates ~32x under lane padding -- count it explicitly).
    per_row = 4 * (2 * _pad128(p * Cin)            # input block (double-buffered)
                   + n_shift * _pad128(p * Cin)    # rolled copies
                   + _pad128(n_shift * p * Cin)    # im2col concat
                   + 2 * _pad128(3 * pc)           # y + epilogue temps
                   + 2 * _pad128(pc)               # act
                   + 2 * _pad128(pc))              # output block (double-buffered)
    fixed = (2 * 4 * (_round8(w_big.shape[0]) * _pad128(w_big.shape[1])
                      + 8 * _pad128(pc3))
             + (2 << 20))                          # weights/bias buffers + slack

    bn_pad, g, tr, foot = _plan_grid(bn, t_pack, per_row, fixed)
    assert bn_pad % g == 0 and bn_pad >= bn and bn_pad // g == tr
    assert g == 1 or (tr * t_pack) % 8 == 0        # whole nodes + sublane alignment
    vmem_limit = int(min(40 << 20, max(16 << 20, 2 * foot)))

    # Channels-last, (batch*node)-major, p time steps packed per row: free row-major
    # reshapes, no data duplication.  Optional dummy nodes keep the grid even.
    x3 = x.reshape(bn, T, Cin).astype(jnp.float32)
    if bn_pad > bn:
        x3 = jnp.pad(x3, ((0, bn_pad - bn), (0, 0), (0, 0)))
    x2 = x3.reshape(bn_pad * t_pack, p * Cin)

    out = pl.pallas_call(
        _timeblock_kernel,
        out_shape=jax.ShapeDtypeStruct((bn_pad, t_out_p, pc), jnp.float32),
        grid_spec=pltpu.PrefetchScalarGridSpec(
            num_scalar_prefetch=0,
            grid=(g,),
            in_specs=[
                pl.BlockSpec((tr * t_pack, p * Cin), lambda i: (i, 0)),
                pl.BlockSpec(w_big.shape, lambda i: (0, 0)),
                pl.BlockSpec(b_big.shape, lambda i: (0, 0)),
            ],
            out_specs=pl.BlockSpec((tr, t_out_p, pc), lambda i: (i, 0, 0)),
        ),
        compiler_params=pltpu.CompilerParams(
            dimension_semantics=("parallel",),
            vmem_limit_bytes=vmem_limit,
        ),
    )(x2, w_big, b_big)

    if bn_pad > bn:
        out = out[:bn]
    # (bn, t_out/p, p*Cout) -> (B, N, t_out, Cout): free row-major reshape.
    return out.reshape(B, N, t_out, cout)


# --------------------------------------------------------------------------- reference
def reference_timeblock(x, w1, b1, w2, b2, w3, b3):
    """Pure-JAX f32 reference matching the PyTorch TimeBlock forward."""
    ksize = w1.shape[0]
    t_out = x.shape[2] - ksize + 1

    def conv(w, b):
        acc = b.reshape(1, 1, 1, -1)
        for k in range(ksize):
            acc = acc + jnp.einsum("bntc,cd->bntd", x[:, :, k:k + t_out, :], w[k])
        return acc

    return jax.nn.relu(conv(w1, b1) + jax.nn.sigmoid(conv(w2, b2)) + conv(w3, b3))


def init_params(key, cin, cout):
    ks = jax.random.split(key, 6)

    def mk(kw, kb):
        return (0.1 * jax.random.normal(kw, (KSIZE, cin, cout), jnp.float32),
                0.1 * jax.random.normal(kb, (1, cout), jnp.float32))

    w1, b1 = mk(ks[0], ks[1])
    w2, b2 = mk(ks[2], ks[3])
    w3, b3 = mk(ks[4], ks[5])
    return w1, b1, w2, b2, w3, b3


# --------------------------------------------------------------------------- main
if __name__ == "__main__":
    B, N, T, Cin, Cout = 2, 16, 16, 4, 64

    key = jax.random.PRNGKey(0)
    k_x, k_p = jax.random.split(key)
    X = jax.random.normal(k_x, (B, N, T, Cin), jnp.float32)
    params = init_params(k_p, Cin, Cout)

    # One-time weight/bias packing, hoisted out of the per-call jit.
    w_big, b_big, p = prepare_timeblock_params(*params, T)

    out = time_block(X, w_big, b_big, p=p, kernel_size=KSIZE)
    jax.block_until_ready(out)

    assert out.shape == (B, N, T - KSIZE + 1, Cout), out.shape

    ref = reference_timeblock(X, *params)
    err = float(jnp.max(jnp.abs(out - ref)))
    # Everything is f32 end-to-end; tolerance only covers the MXU's default f32
    # matmul pass precision at contraction depth 16.
    assert jnp.allclose(out, ref, atol=1e-2, rtol=1e-2), f"max abs diff = {err}"

    print("KERNEL_OK")
</pallas_src>

<mosaic_0001>
module attributes {stable_mosaic.version = 11 : i64} {
  func.func @_timeblock_kernel(%arg0: i32, %arg1: memref<32x8xf32, #tpu.memory_space<vmem>>, %arg2: memref<16x384xf32, #tpu.memory_space<vmem>>, %arg3: memref<1x384xf32, #tpu.memory_space<vmem>>, %arg4: memref<4x7x128xf32, #tpu.memory_space<vmem>>) attributes {dimension_semantics = [#tpu.dimension_semantics<parallel>], iteration_bounds = array<i64: 8>, scalar_prefetch = 0 : i64, scratch_operands = 0 : i64, tpu.core_type = #tpu.core_type<tc>, window_params = [{transform_indices = @transform_0, window_bounds = array<i64: 32, 8>}, {pipeline_mode = #tpu.pipeline_mode<synchronous>, transform_indices = @transform_1, window_bounds = array<i64: 16, 384>}, {pipeline_mode = #tpu.pipeline_mode<synchronous>, transform_indices = @transform_2, window_bounds = array<i64: 1, 384>}, {transform_indices = @transform_3, window_bounds = array<i64: 4, 7, 128>}]} {
    %c0 = arith.constant 0 : index
    %c0_0 = arith.constant 0 : index
    %0 = vector.load %arg1[%c0, %c0_0] : memref<32x8xf32, #tpu.memory_space<vmem>>, vector<32x8xf32>
    %c31_i32 = arith.constant 31 : i32
    %1 = tpu.dynamic_rotate %0 by %c31_i32 dim 0 : vector<32x8xf32>, i32 -> vector<32x8xf32>
    %2 = tpu.concatenate %0, %1 in 1 : vector<32x8xf32>, vector<32x8xf32> -> vector<32x16xf32>
    %c0_1 = arith.constant 0 : index
    %c0_2 = arith.constant 0 : index
    %3 = vector.load %arg2[%c0_1, %c0_2] : memref<16x384xf32, #tpu.memory_space<vmem>>, vector<16x384xf32>
    %cst = arith.constant dense<0.000000e+00> : vector<32x384xf32>
    %4 = tpu.matmul %2, %3, %cst {dimension_numbers = #tpu.dot_dimension_numbers<[1], [0], [0], [1], [0, 0, 1, 1], [], []>} : vector<32x16xf32>, vector<16x384xf32>, vector<32x384xf32> -> vector<32x384xf32>
    %c0_3 = arith.constant 0 : index
    %c0_4 = arith.constant 0 : index
    %5 = vector.load %arg3[%c0_3, %c0_4] : memref<1x384xf32, #tpu.memory_space<vmem>>, vector<1x384xf32>
    %6 = vector.broadcast %5 : vector<1x384xf32> to vector<32x384xf32>
    %7 = arith.addf %4, %6 : vector<32x384xf32>
    %8 = vector.extract_strided_slice %7 {offsets = [0, 0], sizes = [32, 128], strides = [1, 1]} : vector<32x384xf32> to vector<32x128xf32>
    %9 = vector.extract_strided_slice %7 {offsets = [0, 128], sizes = [32, 128], strides = [1, 1]} : vector<32x384xf32> to vector<32x128xf32>
    %10 = vector.extract_strided_slice %7 {offsets = [0, 256], sizes = [32, 128], strides = [1, 1]} : vector<32x384xf32> to vector<32x128xf32>
    %11 = arith.negf %9 : vector<32x128xf32>
    %12 = math.exp %11 : vector<32x128xf32>
    %cst_5 = arith.constant 1.000000e+00 : f32
    %13 = vector.broadcast %cst_5 : f32 to vector<32x128xf32>
    %14 = arith.addf %13, %12 : vector<32x128xf32>
    %15 = arith.divf %13, %14 : vector<32x128xf32>
    %16 = arith.addf %8, %15 : vector<32x128xf32>
    %17 = arith.addf %16, %10 : vector<32x128xf32>
    %cst_6 = arith.constant 0.000000e+00 : f32
    %18 = vector.broadcast %cst_6 : f32 to vector<32x128xf32>
    %19 = arith.maximumf %17, %18 : vector<32x128xf32>
    %20 = vector.extract_strided_slice %19 {offsets = [0, 0], sizes = [7, 128], strides = [1, 1]} : vector<32x128xf32> to vector<7x128xf32>
    %c0_7 = arith.constant 0 : index
    %c0_8 = arith.constant 0 : index
    %c0_9 = arith.constant 0 : index
    %21 = vector.load %arg4[%c0_7, %c0_8, %c0_9] : memref<4x7x128xf32, #tpu.memory_space<vmem>>, vector<1x7x128xf32>
    %22 = vector.shape_cast %21 : vector<1x7x128xf32> to vector<7x128xf32>
    %23 = vector.shape_cast %20 : vector<7x128xf32> to vector<1x7x128xf32>
    tpu.vector_store %arg4[%c0_7, %c0_8, %c0_9], %23 {strides = array<i32>} : memref<4x7x128xf32, #tpu.memory_space<vmem>>, vector<1x7x128xf32>,
    %24 = vector.extract_strided_slice %19 {offsets = [8, 0], sizes = [7, 128], strides = [1, 1]} : vector<32x128xf32> to vector<7x128xf32>
    %c1 = arith.constant 1 : index
    %c0_10 = arith.constant 0 : index
    %c0_11 = arith.constant 0 : index
    %25 = vector.load %arg4[%c1, %c0_10, %c0_11] : memref<4x7x128xf32, #tpu.memory_space<vmem>>, vector<1x7x128xf32>
    %26 = vector.shape_cast %25 : vector<1x7x128xf32> to vector<7x128xf32>
    %27 = vector.shape_cast %24 : vector<7x128xf32> to vector<1x7x128xf32>
    tpu.vector_store %arg4[%c1, %c0_10, %c0_11], %27 {strides = array<i32>} : memref<4x7x128xf32, #tpu.memory_space<vmem>>, vector<1x7x128xf32>,
    %28 = vector.extract_strided_slice %19 {offsets = [16, 0], sizes = [7, 128], strides = [1, 1]} : vector<32x128xf32> to vector<7x128xf32>
    %c2 = arith.constant 2 : index
    %c0_12 = arith.constant 0 : index
    %c0_13 = arith.constant 0 : index
    %29 = vector.load %arg4[%c2, %c0_12, %c0_13] : memref<4x7x128xf32, #tpu.memory_space<vmem>>, vector<1x7x128xf32>
    %30 = vector.shape_cast %29 : vector<1x7x128xf32> to vector<7x128xf32>
    %31 = vector.shape_cast %28 : vector<7x128xf32> to vector<1x7x128xf32>
    tpu.vector_store %arg4[%c2, %c0_12, %c0_13], %31 {strides = array<i32>} : memref<4x7x128xf32, #tpu.memory_space<vmem>>, vector<1x7x128xf32>,
    %32 = vector.extract_strided_slice %19 {offsets = [24, 0], sizes = [7, 128], strides = [1, 1]} : vector<32x128xf32> to vector<7x128xf32>
    %c3 = arith.constant 3 : index
    %c0_14 = arith.constant 0 : index
    %c0_15 = arith.constant 0 : index
    %33 = vector.load %arg4[%c3, %c0_14, %c0_15] : memref<4x7x128xf32, #tpu.memory_space<vmem>>, vector<1x7x128xf32>
    %34 = vector.shape_cast %33 : vector<1x7x128xf32> to vector<7x128xf32>
    %35 = vector.shape_cast %32 : vector<7x128xf32> to vector<1x7x128xf32>
    tpu.vector_store %arg4[%c3, %c0_14, %c0_15], %35 {strides = array<i32>} : memref<4x7x128xf32, #tpu.memory_space<vmem>>, vector<1x7x128xf32>,
    return
  }
  func.func @transform_0(%arg0: i32) -> (i32, i32) {
    %c0_i32 = arith.constant 0 : i32
    %c0_i32_0 = arith.constant 0 : i32
    return %arg0, %c0_i32 : i32, i32
  }
  func.func @transform_1(%arg0: i32) -> (i32, i32) {
    %c0_i32 = arith.constant 0 : i32
    %c0_i32_0 = arith.constant 0 : i32
    %c0_i32_1 = arith.constant 0 : i32
    return %c0_i32, %c0_i32_0 : i32, i32
  }
  func.func @transform_2(%arg0: i32) -> (i32, i32) {
    %c0_i32 = arith.constant 0 : i32
    %c0_i32_0 = arith.constant 0 : i32
    %c0_i32_1 = arith.constant 0 : i32
    return %c0_i32, %c0_i32_0 : i32, i32
  }
  func.func @transform_3(%arg0: i32) -> (i32, i32, i32) {
    %c0_i32 = arith.constant 0 : i32
    %c0_i32_0 = arith.constant 0 : i32
    %c0_i32_1 = arith.constant 0 : i32
    return %arg0, %c0_i32, %c0_i32_0 : i32, i32, i32
  }
}

</mosaic_0001>

<bundles_post_ra>
// kernel: time_block.1
= control target key start
LH: loop header
LB: loop body
LE: loop exit
PB: predicated region body
PF: predicated region fallthrough
CT: control target
= control target key end

     0   :  { %s565_s12 = smov 0   ;;  %s654_s0 = inlined_call_operand.vmem [shape: f32[256,8], index: 0, kind: input, shape index: {}]   ;;  %s655_s1 = inlined_call_operand.vmem [shape: f32[16,384], index: 1, kind: input, shape index: {}]   ;;  %s656_s2 = inlined_call_operand.vmem [shape: f32[1,384], index: 2, kind: input, shape index: {}]   ;;  %s657_s3 = inlined_call_operand.vmem [shape: f32[32,7,128], index: 3, kind: output, shape index: {}]  }
   0x1 LB: > { %s475_s13 = sadd.s32 4294967295, %s542_s12   ;;  %p479_p0 = scmp.ge.s32.totalorder %s542_s12, 1  ;;  %s542_s12 = sphi %s565_s12, %s13_s12  }
   0x2   : > { %p138_p1 = scmp.lt.s32.totalorder %s542_s12, 9 }
   0x4   : > { %p139_p2 = pnand %p479_p0, %p138_p1 }
   0x5   : > { %s480_s14 = sshll.u32 (!%p139_p2), %s475_s13, 2  ;;  %s544_s25 = smov (!%p139_p2), 8  }
   0x6   : > { %142 = sbr.rel (%p139_p2) target bundleno = 314 (0x13a), region = 32  ;;  %p163_p3 = scmp.lt.s32.totalorder (!%p139_p2), %s480_s14, 31 }
   0xb   : > { %v182_v0 = vlaneseq  ;;  %v213_v1 = vld [vmem:[%s655_s1 + $0x18] sm:$0xff]  ;;  %v214_v2 = vld [vmem:[%s655_s1 + $0x20] sm:$0xff]  ;;  %v215_v3 = vld [vmem:[%s655_s1 + $0x28] sm:$0xff]  ;;  %s659_s14 = smov (!%p163_p3, %s480_s14), 31  ;;  %vm205_vm1 = vcmask 64512   ;;  %vm224_vm2 = vcmask 130048  }
   0xc   : > { %505 = vmatpush.msra.mxu3 %v213_v1  ;;  %507 = vmatpush.msra.mxu1 %v214_v2  ;;  %s481_s21 = sshll.u32 %s659_s14, 3  ;;  %v210_v17 = vld [vmem:[%s655_s1] sm:$0xff]  ;;  %v211_v18 = vld [vmem:[%s655_s1 + $0x8] sm:$0xff]  ;;  %v212_v19 = vld [vmem:[%s655_s1 + $0x10] sm:$0xff] }
   0xd   : > { %509 = vmatpush.msra.mxu2 %v215_v3  ;;  %251 = vmatpush.msra.mxu0 %v213_v1  ;;  %v183_v4 = vshrl.u32 %v182_v0, 7  ;;  %s166_s24 = scalar_lea.vmem %s654_s0, %s481_s21  ;;  %v216_v28 = vld [vmem:[%s656_s2] sm:$0x7]  ;;  %s634_s9 = scalar_lea.vmem %s657_s3, %s481_s21 }
   0xe   : > { %v175_v5 = vld [vmem:[%s166_s24 + $0x8] sm:$0xff]  ;;  %v176_v6 = vld [vmem:[%s166_s24 + $0x10] sm:$0xff]  ;;  %v177_v7 = vld [vmem:[%s166_s24 + $0x18] sm:$0xff]  ;;  %506 = vmatpush.msra.mxu3 %v210_v17  ;;  %508 = vmatpush.msra.mxu1 %v211_v18  ;;  %v219_v29 = vperm.slane %v216_v28, 1  ;;  %v620_v52 = vperm.slane %v216_v28, 0  ;;  %v622_v58 = vperm.slane %v216_v28, 2 }
   0xf   : > { %vm184_vm0 = vcmp.lt.s32.totalorder %v183_v4, 7  ;;  %v179_v8 = vrot.slane %v175_v5, 1  ;;  %v180_v9 = vrot.slane %v176_v6, 1  ;;  %v181_v10 = vrot.slane %v177_v7, 1  ;;  %v174_v11 = vld [vmem:[%s166_s24] sm:$0xff]  ;;  %510 = vmatpush.msra.mxu2 %v212_v19  ;;  %252 = vmatpush.msra.mxu0 %v210_v17 }
  0x10   : > { %v178_v14 = vrot.slane %v174_v11, 1 }
  0x11   : > { %v186_v12 = vsel %vm184_vm0, %v179_v8, %v180_v9  ;;  %v185_v13 = vsel %vm184_vm0, %v180_v9, %v181_v10  ;;  %280 = vmatpush.msrb.mxu0 %v214_v2 }
  0x12   : > { %195 = vrot.lane.b32.xlu0 %v186_v12, %s544_s25  ;;  %197 = vrot.lane.b32.xlu1 %v185_v13, %s544_s25  ;;  %v187_v15 = vsel %vm184_vm0, %v178_v14, %v179_v8  ;;  %v188_v16 = vsel %vm184_vm0, %v181_v10, %v178_v14 }
  0x13   : > { %281 = vmatpush.msrb.mxu0 %v211_v18 }
  0x1a   : > { %193 = vrot.lane.b32.xlu0 %v187_v15, %s544_s25  ;;  %199 = vrot.lane.b32.xlu1 %v188_v16, %s544_s25 }
  0x84   : > { %v196_v20 = vpop.permute.xlu0 %195  ;;  %v198_v22 = vpop.permute.xlu1 %197 }
  0x85   : > { %v207_v21 = vsel %vm205_vm1, %v175_v5, %v196_v20  ;;  %v208_v23 = vsel %vm205_vm1, %v176_v6, %v198_v22 }
  0x86   : > { %485 = vmatmul.msk.f32.vlgmr.msra.gmra.mxu3 %vm224_vm2, %v207_v21  ;;  %489 = vmatmul.msk.f32.vlgmr.msra.gmra.mxu1 %vm224_vm2, %v207_v21 }
  0x87   : > { %493 = vmatmul.msk.f32.vlgmr.msra.gmra.mxu2 %vm224_vm2, %v207_v21 }
  0x8c   : > { %v194_v24 = vpop.permute.xlu0 %193  ;;  %v200_v26 = vpop.permute.xlu1 %199 }
  0x8d   : > { %v206_v25 = vsel %vm205_vm1, %v174_v11, %v194_v24  ;;  %v209_v27 = vsel %vm205_vm1, %v177_v7, %v200_v26 }
  0x8e   : > { %484 = vmatmul.msk.f32.vlgmr.msra.gmra.mxu0 %vm224_vm2, %v206_v25  ;;  %486 = vmatmul.msk.f32.gmra.mxu3 %vm224_vm2, %v208_v23 }
  0x8f   : > { %490 = vmatmul.msk.f32.gmra.mxu1 %vm224_vm2, %v208_v23  ;;  %494 = vmatmul.msk.f32.gmra.mxu2 %vm224_vm2, %v208_v23 }
  0x90   : > { %309 = vmatpush.msra.mxu0 %v215_v3 }
  0x92   : > { %310 = vmatpush.msra.mxu0 %v212_v19 }
  0x96   : > { %487 = vmatmul.msk.f32.gmra.mxu3 %vm224_vm2, %v209_v27  ;;  %488 = vmatmul.msk.f32.vlgmr.msrb.gmra.mxu0 %vm224_vm2, %v206_v25 }
  0x97   : > { %491 = vmatmul.msk.f32.gmra.mxu1 %vm224_vm2, %v209_v27  ;;  %495 = vmatmul.msk.f32.gmra.mxu2 %vm224_vm2, %v209_v27 }
  0x9e   : > { %492 = vmatmul.msk.f32.vlgmr.msra.gmra.mxu0 %vm224_vm2, %v206_v25 }
 0x103   : > { %v286_v30 = vpop.f32.mrf.mxu1 }
 0x104   : > { %v287_v31 = vadd.f32 %v286_v30, %v219_v29 }
 0x106   : > { %v497_v32 = vmul.f32 -1.442695, %v287_v31 }
 0x108   : > { %520 = vpow2.f32 %v497_v32 }
 0x109   : > { %v257_v49 = vpop.f32.mrf.mxu3 }
 0x10a   : > { %v315_v55 = vpop.f32.mrf.mxu2  ;;  %v258_v62 = vadd.f32 %v257_v49, %v620_v52 }
 0x10b   : > { %v618_v33 = vpop.f32.mrf.mxu0  ;;  %v316_v4 = vadd.f32 %v315_v55, %v622_v58 }
 0x10c   : > { %v289_v34 = vpop.f32.mrf.mxu1 }
 0x10d   : > { %v290_v35 = vadd.f32 %v289_v34, %v219_v29 }
 0x10e   : > { %v521_v36 = vpop.eup %520 }
 0x10f   : > { %v337_v37 = vadd.f32 1.0, %v521_v36  ;;  %v498_v38 = vmul.f32 -1.442695, %v290_v35 }
 0x111   : > { %522 = vrcp.f32 %v337_v37  ;;  %v366_v51 = vand.u32 2147483648, %v337_v37  ;;  %v364_v54 = vand.u32 2147483647, %v337_v37  ;;  %vm360_vm4 = vweird.f32 %v337_v37  ;;  %v260_v7 = vpop.f32.mrf.mxu3 }
 0x112   : > { %524 = vpow2.f32 %v498_v38  ;;  %v318_v13 = vpop.f32.mrf.mxu2  ;;  %v261_v18 = vadd.f32 %v260_v7, %v620_v52 }
 0x113   : > { %v283_v39 = vpop.f32.mrf.mxu0  ;;  %v367_v60 = vor.u32 1.1754944e-38, %v366_v51  ;;  %vm365_vm6 = vcmp.eq.f32.partialorder %v364_v54, 8.507059e+37  ;;  %v319_v22 = vadd.f32 %v318_v13, %v622_v58 }
 0x114   : > { %v284_v40 = vadd.f32 %v283_v39, %v219_v29  ;;  %v292_v41 = vpop.f32.mrf.mxu1 }
 0x115   : > { %v293_v42 = vadd.f32 %v292_v41, %v219_v29 }
 0x116   : > { %v496_v43 = vmul.f32 -1.442695, %v284_v40 }
 0x117   : > { %v523_v44 = vpop.eup %522  ;;  %v499_v45 = vmul.f32 -1.442695, %v293_v42 }
 0x118   : > { %v525_v46 = vpop.eup %524  ;;  %v356_v47 = vmul.f32 %v523_v44, %v337_v37  ;;  %526 = vpow2.f32 %v496_v43  ;;  %vm361_vm3 = vweird.f32 %v523_v44  ;;  %v255_v37 = vadd.f32 %v618_v33, %v620_v52 }
 0x119   : > { %v338_v48 = vadd.f32 1.0, %v525_v46  ;;  %528 = vpow2.f32 %v499_v45  ;;  %vm362_vm5 = vmor %vm360_vm4, %vm361_vm3  ;;  %v263_v35 = vpop.f32.mrf.mxu3 }
 0x11a   : > { %v357_v50 = vsub.f32 1.0, %v356_v47  ;;  %v321_v43 = vpop.f32.mrf.mxu2  ;;  %v264_v45 = vadd.f32 %v263_v35, %v620_v52 }
 0x11b   : > { %530 = vrcp.f32 %v338_v48  ;;  %v381_v9 = vand.u32 2147483648, %v338_v48  ;;  %v379_v12 = vand.u32 2147483647, %v338_v48  ;;  %vm375_vm8 = vweird.f32 %v338_v48  ;;  %v312_v39 = vpop.f32.mrf.mxu0 }
 0x11c   : > { %v358_v53 = vmul.f32 %v523_v44, %v357_v50  ;;  %v322_v51 = vadd.f32 %v321_v43, %v622_v58 }
 0x11d   : > { %v382_v19 = vor.u32 1.1754944e-38, %v381_v9  ;;  %vm380_vm10 = vcmp.eq.f32.partialorder %v379_v12, 8.507059e+37 }
 0x11e   : > { %v527_v56 = vpop.eup %526  ;;  %v359_v57 = vadd.f32 %v523_v44, %v358_v53 }
 0x11f   : > { %v529_v59 = vpop.eup %528  ;;  %v624_v61 = vadd.f32 1.0, %v527_v56 }
 0x120   : > { %v363_v63 = vsel %vm362_vm5, %v523_v44, %v359_v57  ;;  %v339_v0 = vadd.f32 1.0, %v529_v59 }
 0x121   : > { %v531_v1 = vpop.eup %530  ;;  %v368_v2 = vsel %vm365_vm6, %v367_v60, %v363_v63  ;;  %532 = vrcp.f32 %v624_v61  ;;  %v349_v26 = vand.u32 2147483647, %v624_v61  ;;  %v351_v27 = vand.u32 2147483648, %v624_v61 }
 0x122   : > { %v401_v3 = vadd.f32 %v368_v2, %v258_v62  ;;  %v371_v5 = vmul.f32 %v531_v1, %v338_v48  ;;  %534 = vrcp.f32 %v339_v0  ;;  %vm376_vm7 = vweird.f32 %v531_v1 }
 0x123   : > { %vm377_vm9 = vmor %vm375_vm8, %vm376_vm7  ;;  %v396_v29 = vand.u32 2147483648, %v339_v0  ;;  %v394_v32 = vand.u32 2147483647, %v339_v0  ;;  %vm345_vm13 = vweird.f32 %v624_v61  ;;  %vm390_vm14 = vweird.f32 %v339_v0 }
 0x124   : > { %v405_v6 = vadd.f32 %v401_v3, %v316_v4  ;;  %v372_v8 = vsub.f32 1.0, %v371_v5  ;;  %v352_v40 = vor.u32 1.1754944e-38, %v351_v27  ;;  %vm350_vm1 = vcmp.eq.f32.partialorder %v349_v26, 8.507059e+37 }
 0x125   : > { %v397_v42 = vor.u32 1.1754944e-38, %v396_v29  ;;  %vm395_vm2 = vcmp.eq.f32.partialorder %v394_v32, 8.507059e+37  ;;  %v313_v48 = vadd.f32 %v312_v39, %v622_v58 }
 0x126   : > { %v409_v10 = vmax.f32 %v405_v6, 0.0  ;;  %v373_v11 = vmul.f32 %v531_v1, %v372_v8 }
 0x127   : > { %v533_v14 = vpop.eup %532 }
 0x128   : > { %v535_v15 = vpop.eup %534  ;;  %500 = vst [vmem:[%s634_s9 + $0x8] sm:$0x7f] %v409_v10  ;;  %v374_v16 = vadd.f32 %v531_v1, %v373_v11  ;;  %v341_v17 = vmul.f32 %v533_v14, %v624_v61  ;;  %vm346_vm11 = vweird.f32 %v533_v14 }
 0x129   : > { %v386_v20 = vmul.f32 %v535_v15, %v339_v0  ;;  %vm391_vm12 = vweird.f32 %v535_v15  ;;  %vm347_vm15 = vmor %vm345_vm13, %vm346_vm11 }
 0x12a   : > { %v378_v21 = vsel %vm377_vm9, %v531_v1, %v374_v16  ;;  %v342_v23 = vsub.f32 1.0, %v341_v17  ;;  %vm392_vm0 = vmor %vm390_vm14, %vm391_vm12 }
 0x12b   : > { %v383_v24 = vsel %vm380_vm10, %v382_v19, %v378_v21  ;;  %v387_v25 = vsub.f32 1.0, %v386_v20 }
 0x12c   : > { %v402_v28 = vadd.f32 %v383_v24, %v261_v18  ;;  %v343_v30 = vmul.f32 %v533_v14, %v342_v23 }
 0x12d   : > { %v388_v31 = vmul.f32 %v535_v15, %v387_v25 }
 0x12e   : > { %v406_v34 = vadd.f32 %v402_v28, %v319_v22  ;;  %v344_v36 = vadd.f32 %v533_v14, %v343_v30 }
 0x12f   : > { %v389_v38 = vadd.f32 %v535_v15, %v388_v31 }
 0x130   : > { %v410_v41 = vmax.f32 %v406_v34, 0.0  ;;  %v348_v44 = vsel %vm347_vm15, %v533_v14, %v344_v36 }
 0x131   : > { %v393_v46 = vsel %vm392_vm0, %v535_v15, %v389_v38  ;;  %v353_v47 = vsel %vm350_vm1, %v352_v40, %v348_v44 }
 0x132   : > { %501 = vst [vmem:[%s634_s9 + $0x10] sm:$0x7f] %v410_v41  ;;  %v398_v33 = vsel %vm395_vm2, %v397_v42, %v393_v46  ;;  %v400_v49 = vadd.f32 %v353_v47, %v255_v37 }
 0x133   : > { %v403_v50 = vadd.f32 %v398_v33, %v264_v45 }
 0x134   : > { %v404_v53 = vadd.f32 %v400_v49, %v313_v48 }
 0x135   : > { %v407_v54 = vadd.f32 %v403_v50, %v322_v51 }
 0x136   : > { %v408_v55 = vmax.f32 %v404_v53, 0.0 }
 0x137   : > { %v411_v56 = vmax.f32 %v407_v54, 0.0 }
 0x138   : > { %412 = vst [vmem:[%s634_s9] sm:$0x7f] %v408_v55 }
 0x139   : > { %502 = vst [vmem:[%s634_s9 + $0x18] sm:$0x7f] %v411_v56 }
 0x13a PF: > { %s13_s12 = sadd.s32 1, %s542_s12  }
 0x13b   : > { %p10_p4 = scmp.ge.s32.totalorder %s13_s12, 10  }
 0x13d   :  { %12 = sbr.rel (!%p10_p4) target bundleno = 1 (0x1), region = 65 }

</bundles_post_ra>
